<compile_context>
chip_gen: v7x
topology: tpu7x:2x2x1
jax: 0.10.0
libtpu: 0.0.40
codegen_flags: <defaults>
</compile_context>

<pallas_src>
import jax
import jax.numpy as jnp
from jax.experimental import pallas as pl
from jax.experimental.pallas import tpu as pltpu


def _round_up(x, m):
    return ((x + m - 1) // m) * m


def temp_scale_kernel(invT_ref, x_ref, w_ref, b_ref, o_ref):
    # invT_ref: (1,)       f32 SMEM (scalar prefetch)
    # x_ref:    [tb, F]    f32 VMEM (batch tile of flattened input)
    # w_ref:    [F, 128]   f32 VMEM (resident classifier weights, lane-padded)
    # b_ref:    [1, 128]   f32 VMEM (resident bias, lane-padded)
    # o_ref:    [tb, 128]  f32 VMEM (lane-dense logits tile)
    logits = jnp.dot(x_ref[...], w_ref[...], preferred_element_type=jnp.float32)
    o_ref[...] = (logits + b_ref[...]) * invT_ref[0]


def _choose_tb(B, F, max_tb=512, vmem_budget=40 * 1024 * 1024):
    """Batch-tile size: full batch for tiny B, otherwise a multiple of 8 giving
    >=2 tiles (v7x megacore), capped so double-buffered x + resident W + output
    stay inside a conservative VMEM budget (safe on v5e/v6e/v7x)."""
    if B <= 16:
        return B  # one tile equal to the full batch dim (valid block shape)

    tb = min(max_tb, _round_up(pl.cdiv(B, 2), 8))

    def footprint(t):
        return (2 * t * F * 4       # x, double-buffered
                + F * 128 * 4       # resident W
                + 128 * 4           # bias
                + 2 * t * 128 * 4)  # output, double-buffered

    while tb > 8 and footprint(tb) > vmem_budget:
        tb = max(8, (tb // 2 + 7) // 8 * 8)
    return tb


def make_temperature_scaling(w, b, T=1.0):
    """Builds the fused forward for a frozen linear base_model + temperature T.

    w: [F, N] f32 weights, b: [N] f32 bias. The N -> 128 lane padding of W / b
    is done ONCE here (the base model is frozen), not on every forward call.
    """
    F, N = w.shape
    N_pad = _round_up(max(N, 128), 128)   # keep at 128: kernel is x-BW bound
    # TODO(synk): for very large F (resident W >> a few MiB) reintroduce a K
    # reduction grid axis instead of keeping W fully VMEM-resident.
    w_p = jnp.zeros((F, N_pad), jnp.float32).at[:, :N].set(w.astype(jnp.float32))
    b_p = jnp.zeros((1, N_pad), jnp.float32).at[0, :N].set(b.astype(jnp.float32))
    invT = jnp.array([1.0 / float(T)], dtype=jnp.float32)

    def forward(x):
        B = x.shape[0]
        x_flat = x.reshape(B, -1)           # row-major flatten, same as torch .view
        assert x_flat.shape[1] == F, "input feature size mismatch"

        tb = _choose_tb(B, F)
        nb = pl.cdiv(B, tb)                 # partial last tile handled by Pallas

        vmem_need = (2 * tb * F * 4 + F * N_pad * 4 + N_pad * 4
                     + 2 * tb * N_pad * 4)
        vmem_limit = int(min(max(2 * vmem_need, 32 * 1024 * 1024),
                             100 * 1024 * 1024))

        out = pl.pallas_call(
            temp_scale_kernel,
            out_shape=jax.ShapeDtypeStruct((B, N_pad), jnp.float32),
            grid_spec=pltpu.PrefetchScalarGridSpec(
                num_scalar_prefetch=1,                         # 1/T -> SMEM
                grid=(nb,),
                in_specs=[
                    # x: streamed batch tiles, full-width F (no K grid axis).
                    pl.BlockSpec((tb, F), lambda i, invT_ref: (i, 0)),
                    # W: whole array, constant index map -> VMEM-resident.
                    pl.BlockSpec((F, N_pad), lambda i, invT_ref: (0, 0)),
                    # bias: resident.
                    pl.BlockSpec((1, N_pad), lambda i, invT_ref: (0, 0)),
                ],
                out_specs=pl.BlockSpec((tb, N_pad),
                                       lambda i, invT_ref: (i, 0)),
            ),
            compiler_params=pltpu.CompilerParams(
                dimension_semantics=("parallel",),
                vmem_limit_bytes=vmem_limit,
            ),
            cost_estimate=pl.CostEstimate(
                flops=2 * B * F * N_pad,
                transcendentals=0,
                bytes_accessed=(B * F * 4 + F * N_pad * 4
                                + N_pad * 4 + B * N_pad * 4),
            ),
        )(invT, x_flat, w_p, b_p)

        return out[:, :N]

    return forward


if __name__ == "__main__":
    # Small shapes consistent with an image-classifier input.
    B, C, H, W = 2, 4, 16, 16
    num_classes = 10
    F = C * H * W

    key = jax.random.PRNGKey(0)
    kx, kw, kb = jax.random.split(key, 3)
    x = jax.random.normal(kx, (B, C, H, W), dtype=jnp.float32)
    # Deterministic synthetic frozen base_model parameters (linear classifier).
    w = jax.random.normal(kw, (F, num_classes), dtype=jnp.float32) * 0.02
    b = jax.random.normal(kb, (num_classes,), dtype=jnp.float32) * 0.01

    T = 1.0  # as set in TemperatureScaling.__init__

    forward = make_temperature_scaling(w, b, T)
    out = jax.block_until_ready(forward(x))

    # Pure-JAX f32 reference matching the PyTorch forward numerics.
    ref = (jnp.dot(x.reshape(B, -1), w,
                   preferred_element_type=jnp.float32) + b) / T
    ref = jax.block_until_ready(ref)

    assert out.shape == (B, num_classes)
    assert jnp.allclose(out, ref, atol=2e-3, rtol=2e-3), "mismatch vs reference"

    print("KERNEL_OK")
</pallas_src>

<mosaic_0001>
module attributes {stable_mosaic.version = 11 : i64} {
  func.func @temp_scale_kernel(%arg0: i32, %arg1: memref<1xf32, #tpu.memory_space<smem>>, %arg2: memref<2x1024xf32, #tpu.memory_space<vmem>>, %arg3: memref<1024x128xf32, #tpu.memory_space<vmem>>, %arg4: memref<1x128xf32, #tpu.memory_space<vmem>>, %arg5: memref<2x128xf32, #tpu.memory_space<vmem>>) attributes {dimension_semantics = [#tpu.dimension_semantics<parallel>], iteration_bounds = array<i64: 1>, scalar_prefetch = 1 : i64, scratch_operands = 0 : i64, tpu.core_type = #tpu.core_type<tc>, window_params = [{transform_indices = @transform_0, window_bounds = array<i64: 2, 1024>}, {pipeline_mode = #tpu.pipeline_mode<synchronous>, transform_indices = @transform_1, window_bounds = array<i64: 1024, 128>}, {pipeline_mode = #tpu.pipeline_mode<synchronous>, transform_indices = @transform_2, window_bounds = array<i64: 1, 128>}, {transform_indices = @transform_3, window_bounds = array<i64: 2, 128>}]} {
    %c0 = arith.constant 0 : index
    %c0_0 = arith.constant 0 : index
    %0 = vector.load %arg2[%c0, %c0_0] : memref<2x1024xf32, #tpu.memory_space<vmem>>, vector<2x1024xf32>
    %c0_1 = arith.constant 0 : index
    %c0_2 = arith.constant 0 : index
    %1 = vector.load %arg3[%c0_1, %c0_2] : memref<1024x128xf32, #tpu.memory_space<vmem>>, vector<1024x128xf32>
    %cst = arith.constant dense<0.000000e+00> : vector<2x128xf32>
    %2 = tpu.matmul %0, %1, %cst {dimension_numbers = #tpu.dot_dimension_numbers<[1], [0], [0], [1], [0, 0, 1, 1], [], []>} : vector<2x1024xf32>, vector<1024x128xf32>, vector<2x128xf32> -> vector<2x128xf32>
    %c0_3 = arith.constant 0 : index
    %c0_4 = arith.constant 0 : index
    %3 = vector.load %arg4[%c0_3, %c0_4] : memref<1x128xf32, #tpu.memory_space<vmem>>, vector<1x128xf32>
    %4 = vector.broadcast %3 : vector<1x128xf32> to vector<2x128xf32>
    %5 = arith.addf %2, %4 : vector<2x128xf32>
    %c0_5 = arith.constant 0 : index
    %6 = memref.load %arg1[%c0_5] : memref<1xf32, #tpu.memory_space<smem>>
    %7 = vector.broadcast %6 : f32 to vector<2x128xf32>
    %8 = arith.mulf %5, %7 : vector<2x128xf32>
    %c0_6 = arith.constant 0 : index
    %c0_7 = arith.constant 0 : index
    %9 = vector.load %arg5[%c0_6, %c0_7] : memref<2x128xf32, #tpu.memory_space<vmem>>, vector<2x128xf32>
    tpu.vector_store %arg5[%c0_6, %c0_7], %8 {strides = array<i32>} : memref<2x128xf32, #tpu.memory_space<vmem>>, vector<2x128xf32>,
    return
  }
  func.func @transform_0(%arg0: i32, %arg1: memref<1xf32, #tpu.memory_space<smem>>) -> (i32, i32) {
    %c0_i32 = arith.constant 0 : i32
    %c0_i32_0 = arith.constant 0 : i32
    return %arg0, %c0_i32 : i32, i32
  }
  func.func @transform_1(%arg0: i32, %arg1: memref<1xf32, #tpu.memory_space<smem>>) -> (i32, i32) {
    %c0_i32 = arith.constant 0 : i32
    %c0_i32_0 = arith.constant 0 : i32
    %c0_i32_1 = arith.constant 0 : i32
    return %c0_i32, %c0_i32_0 : i32, i32
  }
  func.func @transform_2(%arg0: i32, %arg1: memref<1xf32, #tpu.memory_space<smem>>) -> (i32, i32) {
    %c0_i32 = arith.constant 0 : i32
    %c0_i32_0 = arith.constant 0 : i32
    %c0_i32_1 = arith.constant 0 : i32
    return %c0_i32, %c0_i32_0 : i32, i32
  }
  func.func @transform_3(%arg0: i32, %arg1: memref<1xf32, #tpu.memory_space<smem>>) -> (i32, i32) {
    %c0_i32 = arith.constant 0 : i32
    %c0_i32_0 = arith.constant 0 : i32
    return %arg0, %c0_i32 : i32, i32
  }
}

</mosaic_0001>

<bundles_post_ra>
// kernel: tpu_custom_call.1
= control target key start
LH: loop header
LB: loop body
LE: loop exit
PB: predicated region body
PF: predicated region fallthrough
CT: control target
= control target key end

     0   :  { %10 = vsyncpa [#allocation5], 0  ;;  %s964_s0 = inlined_call_operand.<no memory space> [shape: f32[1], index: 0, kind: input, shape index: {}]   ;;  %s965_s1 = inlined_call_operand.hbm [shape: f32[2,1024], index: 1, kind: input, shape index: {}]   ;;  %s966_s2 = inlined_call_operand.hbm [shape: f32[1024,128], index: 2, kind: input, shape index: {}]   ;;  %s967_s3 = inlined_call_operand.vmem [shape: f32[1,128], index: 3, kind: input, shape index: {}]   ;;  %s968_s4 = inlined_call_operand.hbm [shape: f32[2,128], index: 4, kind: output, shape index: {}]  }
   0x1   :  { %11 = vsyncpa [#allocation8], 0 }
   0x2   :  { %12 = vsyncpa [#allocation6], 0  ;;  %s873_s15 = smov [#allocation4]   ;;  %s874_s17 = smov [#allocation7]  }
   0x3   :  { %s19_s16 = sshll.u32 %s873_s15, 4  ;;  %s28_s18 = sshll.u32 %s874_s17, 4  ;;  %s20_s16 = int_to_ptr.vmem [resolvable:$true] %s19_s16  ;;  %s904_s18 = int_to_ptr.vmem [resolvable:$true] %s28_s18 }
   0x4   :  { %s801_s21 = scalar_lea.hbm %s965_s1, 256 }
   0x5   :  { %p802_p0 = scmp.ne.s32.totalorder %s965_s1, %s801_s21  ;;  %p805_p1 = scmp.lt.u32.totalorder %s801_s21, %s965_s1 }
   0x7   :  { %p807_p2 = pnand %p805_p1, %p802_p0 }
   0x9   :  { %810 = shalt.err (!%p807_p2)
}
   0xa   :  { %s811_s26 = scalar_lea.vmem %s20_s16, 256  ;;  %p816_p4 = scmp.lt.s32.totalorder %s20_s16, %s20_s16 }
   0xb   :  { %p812_p3 = scmp.ne.s32.totalorder %s20_s16, %s811_s26  ;;  %p817_p5 = scmp.lt.s32.totalorder %s811_s26, %s811_s26 }
   0xd   :  { %p818_p6 = por %p817_p5, %p816_p4 }
   0xf   :  { %p819_p7 = pnand %p818_p6, %p812_p3 }
  0x11   :  { %822 = shalt.err (!%p819_p7)
}
  0x12   :  { %22 = dma.hbm_to_vmem [thread:$0]  %s965_s1, 256, %s20_s16, [#allocation5]  }
  0x13   :  { %s823_s5 = scalar_lea.hbm %s966_s2, 16384 }
  0x14   :  { %p824_p8 = scmp.ne.s32.totalorder %s966_s2, %s823_s5  ;;  %p827_p9 = scmp.lt.u32.totalorder %s823_s5, %s966_s2 }
  0x16   :  { %p829_p10 = pnand %p827_p9, %p824_p8 }
  0x18   :  { %832 = shalt.err (!%p829_p10)
}
  0x19   :  { %s833_s10 = scalar_lea.vmem %s904_s18, 16384  ;;  %p838_p12 = scmp.lt.s32.totalorder %s904_s18, %s904_s18 }
  0x1a   :  { %p834_p11 = scmp.ne.s32.totalorder %s904_s18, %s833_s10  ;;  %p839_p13 = scmp.lt.s32.totalorder %s833_s10, %s833_s10 }
  0x1c   :  { %p840_p0 = por %p839_p13, %p838_p12 }
  0x1e   :  { %p841_p1 = pnand %p840_p0, %p834_p11 }
  0x20   :  { %844 = shalt.err (!%p841_p1)
}
  0x21   :  { %s875_s1 = smov 128   ;;  %s876_s11 = smov 8  }
  0x22   :  { %34 = dma.hbm_to_vmem [thread:$0]  %s966_s2, 16384, %s904_s18, [#allocation8], %s875_s1, %s875_s1, %s876_s11  }
  0x23   :  { %867 = dma.done.wait [#allocation5], 256  }
  0x24   :  { %868 = vsyncadd [#allocation5], 4294967040 }
  0x25   :  { %869 = dma.done.wait [#allocation8], 16384  }
  0x26   :  { %870 = vsyncadd [#allocation8], 4294950912  ;;  %v61_v0 = vld [vmem:[#allocation7 + $0x80] sm:$0xff]  ;;  %v62_v1 = vld [vmem:[#allocation7 + $0x88] sm:$0xff]  ;;  %v877_v47 = vmov 1983009808   ;;  %v186_v49 = vlaneseq }
  0x27   :  { %v45_v2 = vld [vmem:[#allocation7] sm:$0xff]  ;;  %v665_v3 = vpack.c.bf16 %v62_v1, %v61_v0  ;;  %v46_v4 = vld [vmem:[#allocation7 + $0x8] sm:$0xff]  ;;  %v63_v11 = vld [vmem:[#allocation7 + $0x90] sm:$0xff]  ;;  %v184_v48 = vunpack.c.l.s4 %v877_v47  ;;  %s878_s17 = smov [#allocation9]  }
  0x28   :  { %v93_v5 = vld [vmem:[#allocation7 + $0x180] sm:$0xff]  ;;  %v94_v6 = vld [vmem:[#allocation7 + $0x188] sm:$0xff]  ;;  %v667_v7 = vpack.c.bf16 %v46_v4, %v45_v2  ;;  %v64_v13 = vld [vmem:[#allocation7 + $0x98] sm:$0xff]  ;;  %v187_v0 = vshrl.u32 %v186_v49, 7 }
  0x29   :  { %v697_v8 = vpack.c.bf16 %v94_v6, %v93_v5  ;;  %v77_v9 = vld [vmem:[#allocation7 + $0x100] sm:$0xff]  ;;  %v78_v10 = vld [vmem:[#allocation7 + $0x108] sm:$0xff]  ;;  %666 = vmatprep.subr.bf16.mxu0 %v665_v3  ;;  %v47_v14 = vld [vmem:[#allocation7 + $0x10] sm:$0xff]  ;;  %v669_v16 = vpack.c.bf16 %v64_v13, %v63_v11  ;;  %v185_v63 = vunpack.c.0.s8 %v184_v48 }
  0x2a   :  { %v699_v12 = vpack.c.bf16 %v78_v10, %v77_v9  ;;  %v48_v15 = vld [vmem:[#allocation7 + $0x18] sm:$0xff]  ;;  %668 = vmatpush3.bf16.msra.mxu0 %v667_v7  ;;  %v95_v18 = vld [vmem:[#allocation7 + $0x190] sm:$0xff]  ;;  %v65_v23 = vld [vmem:[#allocation7 + $0xa0] sm:$0xff] }
  0x2b   :  { %698 = vmatprep.subr.bf16.mxu1 %v697_v8  ;;  %v671_v17 = vpack.c.bf16 %v48_v15, %v47_v14  ;;  %v96_v19 = vld [vmem:[#allocation7 + $0x198] sm:$0xff]  ;;  %v79_v20 = vld [vmem:[#allocation7 + $0x110] sm:$0xff]  ;;  %v66_v24 = vld [vmem:[#allocation7 + $0xa8] sm:$0xff]  ;;  %670 = vmatprep.subr.bf16.mxu0 %v669_v16  ;;  %v935_v13 = vsub.s32 %v185_v63, %v187_v0 }
  0x2c   :  { %700 = vmatpush3.bf16.msra.mxu1 %v699_v12  ;;  %v701_v21 = vpack.c.bf16 %v96_v19, %v95_v18  ;;  %v80_v22 = vld [vmem:[#allocation7 + $0x118] sm:$0xff]  ;;  %v673_v26 = vpack.c.bf16 %v66_v24, %v65_v23  ;;  %v49_v27 = vld [vmem:[#allocation7 + $0x20] sm:$0xff]  ;;  %v50_v28 = vld [vmem:[#allocation7 + $0x28] sm:$0xff] }
  0x2d   :  { %v703_v25 = vpack.c.bf16 %v80_v22, %v79_v20  ;;  %v97_v29 = vld [vmem:[#allocation7 + $0x1a0] sm:$0xff]  ;;  %v98_v30 = vld [vmem:[#allocation7 + $0x1a8] sm:$0xff]  ;;  %v675_v33 = vpack.c.bf16 %v50_v28, %v49_v27  ;;  %v67_v35 = vld [vmem:[#allocation7 + $0xb0] sm:$0xff] }
  0x2e   :  { %702 = vmatprep.subr.bf16.mxu1 %v701_v21  ;;  %v81_v31 = vld [vmem:[#allocation7 + $0x120] sm:$0xff]  ;;  %v82_v32 = vld [vmem:[#allocation7 + $0x128] sm:$0xff]  ;;  %672 = vmatpush3.bf16.msra.mxu0 %v671_v17  ;;  %v705_v34 = vpack.c.bf16 %v98_v30, %v97_v29  ;;  %v68_v36 = vld [vmem:[#allocation7 + $0xb8] sm:$0xff] }
  0x2f   :  { %v51_v37 = vld [vmem:[#allocation7 + $0x30] sm:$0xff]  ;;  %674 = vmatprep.subr.bf16.mxu0 %v673_v26  ;;  %v707_v38 = vpack.c.bf16 %v82_v32, %v81_v31  ;;  %v677_v39 = vpack.c.bf16 %v68_v36, %v67_v35  ;;  %v52_v40 = vld [vmem:[#allocation7 + $0x38] sm:$0xff]  ;;  %v69_v46 = vld [vmem:[#allocation7 + $0xc0] sm:$0xff] }
  0x30   :  { %704 = vmatpush3.bf16.msra.mxu1 %v703_v25  ;;  %v99_v41 = vld [vmem:[#allocation7 + $0x1b0] sm:$0xff]  ;;  %v100_v42 = vld [vmem:[#allocation7 + $0x1b8] sm:$0xff]  ;;  %v70_v50 = vld [vmem:[#allocation7 + $0xc8] sm:$0xff]  ;;  %v679_v51 = vpack.c.bf16 %v52_v40, %v51_v37 }
  0x31   :  { %706 = vmatprep.subr.bf16.mxu1 %v705_v34  ;;  %v709_v43 = vpack.c.bf16 %v100_v42, %v99_v41  ;;  %v83_v44 = vld [vmem:[#allocation7 + $0x130] sm:$0xff]  ;;  %v84_v45 = vld [vmem:[#allocation7 + $0x138] sm:$0xff]  ;;  %v101_v52 = vld [vmem:[#allocation7 + $0x1c0] sm:$0xff]  ;;  %v681_v55 = vpack.c.bf16 %v70_v50, %v69_v46 }
  0x32   :  { %676 = vmatpush3.bf16.msra.mxu0 %v675_v33  ;;  %v102_v53 = vld [vmem:[#allocation7 + $0x1c8] sm:$0xff]  ;;  %v711_v54 = vpack.c.bf16 %v84_v45, %v83_v44  ;;  %v53_v56 = vld [vmem:[#allocation7 + $0x40] sm:$0xff]  ;;  %v71_v61 = vld [vmem:[#allocation7 + $0xd0] sm:$0xff] }
  0x33   :  { %678 = vmatprep.subr.bf16.mxu0 %v677_v39  ;;  %v54_v57 = vld [vmem:[#allocation7 + $0x48] sm:$0xff]  ;;  %v85_v58 = vld [vmem:[#allocation7 + $0x140] sm:$0xff]  ;;  %v713_v59 = vpack.c.bf16 %v102_v53, %v101_v52  ;;  %v72_v62 = vld [vmem:[#allocation7 + $0xd8] sm:$0xff] }
  0x34   :  { %708 = vmatpush3.bf16.msra.mxu1 %v707_v38  ;;  %v86_v60 = vld [vmem:[#allocation7 + $0x148] sm:$0xff]  ;;  %v103_v1 = vld [vmem:[#allocation7 + $0x1d0] sm:$0xff]  ;;  %v104_v2 = vld [vmem:[#allocation7 + $0x1d8] sm:$0xff]  ;;  %v683_v3 = vpack.c.bf16 %v54_v57, %v53_v56  ;;  %v685_v5 = vpack.c.bf16 %v72_v62, %v71_v61 }
  0x35   :  { %710 = vmatprep.subr.bf16.mxu1 %v709_v43  ;;  %v715_v4 = vpack.c.bf16 %v86_v60, %v85_v58  ;;  %v55_v6 = vld [vmem:[#allocation7 + $0x50] sm:$0xff]  ;;  %v56_v7 = vld [vmem:[#allocation7 + $0x58] sm:$0xff]  ;;  %v717_v9 = vpack.c.bf16 %v104_v2, %v103_v1  ;;  %v73_v11 = vld [vmem:[#allocation7 + $0xe0] sm:$0xff] }
  0x36   :  { %680 = vmatpush3.bf16.msra.mxu0 %v679_v51  ;;  %v87_v8 = vld [vmem:[#allocation7 + $0x150] sm:$0xff]  ;;  %v88_v10 = vld [vmem:[#allocation7 + $0x158] sm:$0xff]  ;;  %v74_v12 = vld [vmem:[#allocation7 + $0xe8] sm:$0xff]  ;;  %v687_v16 = vpack.c.bf16 %v56_v7, %v55_v6 }
  0x37   :  { %682 = vmatprep.subr.bf16.mxu0 %v681_v55  ;;  %v105_v14 = vld [vmem:[#allocation7 + $0x1e0] sm:$0xff]  ;;  %v106_v15 = vld [vmem:[#allocation7 + $0x1e8] sm:$0xff]  ;;  %v719_v18 = vpack.c.bf16 %v88_v10, %v87_v8  ;;  %v689_v19 = vpack.c.bf16 %v74_v12, %v73_v11  ;;  %v43_v22 = vld [vmem:[#allocation4] sm:$0xff] }
  0x38   :  { %712 = vmatpush3.bf16.msra.mxu1 %v711_v54  ;;  %v57_v17 = vld [vmem:[#allocation7 + $0x60] sm:$0xff]  ;;  %v58_v20 = vld [vmem:[#allocation7 + $0x68] sm:$0xff]  ;;  %v721_v23 = vpack.c.bf16 %v106_v15, %v105_v14  ;;  %v75_v25 = vld [vmem:[#allocation7 + $0xf0] sm:$0xff]  ;;  %v189_v27 = vrot.slane %v43_v22, %v935_v13  ;;  %v182_v28 = vcombine.high %v43_v22, %v43_v22 }
  0x39   :  { %714 = vmatprep.subr.bf16.mxu1 %v713_v59  ;;  %v89_v21 = vld [vmem:[#allocation7 + $0x160] sm:$0xff]  ;;  %v90_v24 = vld [vmem:[#allocation7 + $0x168] sm:$0xff]  ;;  %v76_v26 = vld [vmem:[#allocation7 + $0xf8] sm:$0xff]  ;;  %v691_v31 = vpack.c.bf16 %v58_v20, %v57_v17 }
  0x3a   :  { %684 = vmatpush3.bf16.msra.mxu0 %v683_v3  ;;  %v107_v29 = vld [vmem:[#allocation7 + $0x1f0] sm:$0xff]  ;;  %v108_v30 = vld [vmem:[#allocation7 + $0x1f8] sm:$0xff]  ;;  %v197_v32 = vcombine.high %v189_v27, %v189_v27  ;;  %v196_v33 = vrot.slane %v182_v28, %v935_v13  ;;  %v723_v34 = vpack.c.bf16 %v90_v24, %v89_v21  ;;  %v693_v35 = vpack.c.bf16 %v76_v26, %v75_v25  ;;  %v125_v41 = vld [vmem:[#allocation7 + $0x280] sm:$0xff] }
  0x3b   :  { %686 = vmatprep.subr.bf16.mxu0 %v685_v5  ;;  %v59_v36 = vld [vmem:[#allocation7 + $0x70] sm:$0xff]  ;;  %v60_v37 = vld [vmem:[#allocation7 + $0x78] sm:$0xff]  ;;  %v725_v39 = vpack.c.bf16 %v108_v30, %v107_v29  ;;  %v126_v42 = vld [vmem:[#allocation7 + $0x288] sm:$0xff] }
  0x3c   :  { %716 = vmatpush3.bf16.msra.mxu1 %v715_v4  ;;  %v91_v38 = vld [vmem:[#allocation7 + $0x170] sm:$0xff]  ;;  %v92_v40 = vld [vmem:[#allocation7 + $0x178] sm:$0xff]  ;;  %288 = vmatprep.mubr.f32.mxu0 %v197_v32  ;;  %v198_v43 = vcombine.high %v196_v33, %v196_v33  ;;  %v157_v44 = vld [vmem:[#allocation7 + $0x380] sm:$0xff]  ;;  %v695_v46 = vpack.c.bf16 %v60_v37, %v59_v36  ;;  %v729_v48 = vpack.c.bf16 %v126_v42, %v125_v41 }
  0x3d   :  { %718 = vmatprep.subr.bf16.mxu1 %v717_v9  ;;  %v158_v45 = vld [vmem:[#allocation7 + $0x388] sm:$0xff]  ;;  %v727_v47 = vpack.c.bf16 %v92_v40, %v91_v38  ;;  %v109_v49 = vld [vmem:[#allocation7 + $0x200] sm:$0xff]  ;;  %v127_v54 = vld [vmem:[#allocation7 + $0x290] sm:$0xff] }
  0x3e   :  { %688 = vmatpush3.bf16.msra.mxu0 %v687_v16  ;;  %358 = vmatprep.mubr.f32.mxu1 %v198_v43  ;;  %v110_v50 = vld [vmem:[#allocation7 + $0x208] sm:$0xff]  ;;  %v141_v51 = vld [vmem:[#allocation7 + $0x300] sm:$0xff]  ;;  %v761_v52 = vpack.c.bf16 %v158_v45, %v157_v44  ;;  %v128_v55 = vld [vmem:[#allocation7 + $0x298] sm:$0xff] }
  0x3f   :  { %690 = vmatprep.subr.bf16.mxu0 %v689_v19  ;;  %v142_v53 = vld [vmem:[#allocation7 + $0x308] sm:$0xff]  ;;  %v159_v56 = vld [vmem:[#allocation7 + $0x390] sm:$0xff]  ;;  %v160_v57 = vld [vmem:[#allocation7 + $0x398] sm:$0xff]  ;;  %v731_v58 = vpack.c.bf16 %v110_v50, %v109_v49  ;;  %v733_v60 = vpack.c.bf16 %v128_v55, %v127_v54 }
  0x40   :  { %720 = vmatpush3.bf16.msra.mxu1 %v719_v18  ;;  %v763_v59 = vpack.c.bf16 %v142_v53, %v141_v51  ;;  %v111_v61 = vld [vmem:[#allocation7 + $0x210] sm:$0xff]  ;;  %v112_v62 = vld [vmem:[#allocation7 + $0x218] sm:$0xff]  ;;  %v765_v0 = vpack.c.bf16 %v160_v57, %v159_v56  ;;  %v129_v2 = vld [vmem:[#allocation7 + $0x2a0] sm:$0xff] }
  0x41   :  { %722 = vmatprep.subr.bf16.mxu1 %v721_v23  ;;  %v143_v63 = vld [vmem:[#allocation7 + $0x310] sm:$0xff]  ;;  %v144_v1 = vld [vmem:[#allocation7 + $0x318] sm:$0xff]  ;;  %v130_v3 = vld [vmem:[#allocation7 + $0x2a8] sm:$0xff]  ;;  %v735_v6 = vpack.c.bf16 %v112_v62, %v111_v61 }
  0x42   :  { %692 = vmatpush3.bf16.msra.mxu0 %v691_v31  ;;  %v161_v4 = vld [vmem:[#allocation7 + $0x3a0] sm:$0xff]  ;;  %v162_v5 = vld [vmem:[#allocation7 + $0x3a8] sm:$0xff]  ;;  %v767_v7 = vpack.c.bf16 %v144_v1, %v143_v63  ;;  %v737_v8 = vpack.c.bf16 %v130_v3, %v129_v2  ;;  %v131_v15 = vld [vmem:[#allocation7 + $0x2b0] sm:$0xff] }
  0x43   :  { %694 = vmatprep.subr.bf16.mxu0 %v693_v35  ;;  %v113_v9 = vld [vmem:[#allocation7 + $0x220] sm:$0xff]  ;;  %v114_v10 = vld [vmem:[#allocation7 + $0x228] sm:$0xff]  ;;  %v769_v12 = vpack.c.bf16 %v162_v5, %v161_v4  ;;  %v132_v16 = vld [vmem:[#allocation7 + $0x2b8] sm:$0xff] }
  0x44   :  { %724 = vmatpush3.bf16.msra.mxu1 %v723_v34  ;;  %v145_v11 = vld [vmem:[#allocation7 + $0x320] sm:$0xff]  ;;  %v146_v14 = vld [vmem:[#allocation7 + $0x328] sm:$0xff]  ;;  %v163_v17 = vld [vmem:[#allocation7 + $0x3b0] sm:$0xff]  ;;  %v739_v19 = vpack.c.bf16 %v114_v10, %v113_v9  ;;  %v741_v21 = vpack.c.bf16 %v132_v16, %v131_v15 }
  0x45   :  { %726 = vmatprep.subr.bf16.mxu1 %v725_v39  ;;  %v164_v18 = vld [vmem:[#allocation7 + $0x3b8] sm:$0xff]  ;;  %v771_v20 = vpack.c.bf16 %v146_v14, %v145_v11  ;;  %v115_v22 = vld [vmem:[#allocation7 + $0x230] sm:$0xff]  ;;  %v134_v28 = vld [vmem:[#allocation7 + $0x2c8] sm:$0xff] }
  0x46   :  { %696 = vmatpush3.bf16.msra.mxu0 %v695_v46  ;;  %v116_v23 = vld [vmem:[#allocation7 + $0x238] sm:$0xff]  ;;  %v147_v24 = vld [vmem:[#allocation7 + $0x330] sm:$0xff]  ;;  %v773_v25 = vpack.c.bf16 %v164_v18, %v163_v17  ;;  %v165_v29 = vld [vmem:[#allocation7 + $0x3c0] sm:$0xff] }
  0x47   :  { %730 = vmatprep.subr.bf16.mxu0 %v729_v48  ;;  %v148_v26 = vld [vmem:[#allocation7 + $0x338] sm:$0xff]  ;;  %v166_v30 = vld [vmem:[#allocation7 + $0x3c8] sm:$0xff]  ;;  %v743_v32 = vpack.c.bf16 %v116_v23, %v115_v22  ;;  %v117_v37 = vld [vmem:[#allocation7 + $0x240] sm:$0xff] }
  0x48   :  { %728 = vmatpush3.bf16.msra.mxu1 %v727_v47  ;;  %v44_v31 = vld [vmem:[#allocation4 + $0x8] sm:$0xff]  ;;  %v775_v35 = vpack.c.bf16 %v148_v26, %v147_v24  ;;  %v118_v38 = vld [vmem:[#allocation7 + $0x248] sm:$0xff]  ;;  %v149_v39 = vld [vmem:[#allocation7 + $0x340] sm:$0xff]  ;;  %v777_v40 = vpack.c.bf16 %v166_v30, %v165_v29 }
  0x49   :  { %762 = vmatprep.subr.bf16.mxu1 %v761_v52  ;;  %289 = vmatmul.mubr.f32.vlgmr.msra.gmra.mrb[0].mxu0 %v189_v27  ;;  %v133_v27 = vld [vmem:[#allocation7 + $0x2c0] sm:$0xff]  ;;  %v199_v34 = vcombine.high %v44_v31, %v44_v31  ;;  %v150_v41 = vld [vmem:[#allocation7 + $0x348] sm:$0xff]  ;;  %v135_v42 = vld [vmem:[#allocation7 + $0x2d0] sm:$0xff]  ;;  %v747_v48 = vpack.c.bf16 %v118_v38, %v117_v37 }
  0x4a   :  { %732 = vmatpush3.bf16.msra.mxu0 %v731_v58  ;;  %v745_v36 = vpack.c.bf16 %v134_v28, %v133_v27  ;;  %v136_v43 = vld [vmem:[#allocation7 + $0x2d8] sm:$0xff]  ;;  %v167_v46 = vld [vmem:[#allocation7 + $0x3d0] sm:$0xff]  ;;  %v779_v50 = vpack.c.bf16 %v150_v41, %v149_v39  ;;  %v137_v57 = vld [vmem:[#allocation7 + $0x2e0] sm:$0xff] }
  0x4b   :  { %359 = vmatmul.mubr.f32.vlgmr.msra.gmra.mrb[0].mxu1 %v196_v33  ;;  %734 = vmatprep.subr.bf16.mxu0 %v733_v60  ;;  %v940_v33 = vrot.slane %v44_v31, %v935_v13  ;;  %v213_v45 = vrot.slane %v199_v34, %v935_v13  ;;  %v168_v47 = vld [vmem:[#allocation7 + $0x3d8] sm:$0xff]  ;;  %v749_v51 = vpack.c.bf16 %v136_v43, %v135_v42  ;;  %v119_v52 = vld [vmem:[#allocation7 + $0x250] sm:$0xff]  ;;  %v138_v58 = vld [vmem:[#allocation7 + $0x2e8] sm:$0xff] }
  0x4c   :  { %764 = vmatpush3.bf16.msra.mxu1 %v763_v59  ;;  %v120_v53 = vld [vmem:[#allocation7 + $0x258] sm:$0xff]  ;;  %v151_v54 = vld [vmem:[#allocation7 + $0x350] sm:$0xff]  ;;  %v781_v55 = vpack.c.bf16 %v168_v47, %v167_v46  ;;  %v169_v13 = vld [vmem:[#allocation7 + $0x3e0] sm:$0xff]  ;;  %v753_v62 = vpack.c.bf16 %v138_v58, %v137_v57 }
  0x4d   :  { %766 = vmatprep.subr.bf16.mxu1 %v765_v0  ;;  %v214_v44 = vcombine.high %v940_v33, %v940_v33  ;;  %v215_v49 = vcombine.high %v213_v45, %v213_v45  ;;  %v152_v56 = vld [vmem:[#allocation7 + $0x358] sm:$0xff]  ;;  %v170_v59 = vld [vmem:[#allocation7 + $0x3e8] sm:$0xff]  ;;  %v751_v60 = vpack.c.bf16 %v120_v53, %v119_v52  ;;  %v121_v63 = vld [vmem:[#allocation7 + $0x260] sm:$0xff] }
  0x4e   :  { %736 = vmatpush3.bf16.msra.mxu0 %v735_v6  ;;  %v783_v61 = vpack.c.bf16 %v152_v56, %v151_v54  ;;  %v122_v0 = vld [vmem:[#allocation7 + $0x268] sm:$0xff]  ;;  %v153_v1 = vld [vmem:[#allocation7 + $0x360] sm:$0xff]  ;;  %v785_v2 = vpack.c.bf16 %v170_v59, %v169_v13  ;;  %v139_v4 = vld [vmem:[#allocation7 + $0x2f0] sm:$0xff] }
  0x4f   :  { %738 = vmatprep.subr.bf16.mxu0 %v737_v8  ;;  %428 = vmatprep.mubr.f32.mxu0 %v214_v44  ;;  %v154_v3 = vld [vmem:[#allocation7 + $0x368] sm:$0xff]  ;;  %v140_v5 = vld [vmem:[#allocation7 + $0x2f8] sm:$0xff]  ;;  %v171_v6 = vld [vmem:[#allocation7 + $0x3f0] sm:$0xff]  ;;  %v755_v8 = vpack.c.bf16 %v122_v0, %v121_v63 }
  0x50   :  { %768 = vmatpush3.bf16.msra.mxu1 %v767_v7  ;;  %498 = vmatprep.mubr.f32.mxu1 %v215_v49  ;;  %v172_v7 = vld [vmem:[#allocation7 + $0x3f8] sm:$0xff]  ;;  %v787_v9 = vpack.c.bf16 %v154_v3, %v153_v1  ;;  %v757_v10 = vpack.c.bf16 %v140_v5, %v139_v4  ;;  %v123_v11 = vld [vmem:[#allocation7 + $0x270] sm:$0xff] }
  0x51   :  { %770 = vmatprep.subr.bf16.mxu1 %v769_v12  ;;  %v124_v12 = vld [vmem:[#allocation7 + $0x278] sm:$0xff]  ;;  %v789_v14 = vpack.c.bf16 %v172_v7, %v171_v6  ;;  %v155_v15 = vld [vmem:[#allocation7 + $0x370] sm:$0xff] }
  0x52   :  { %740 = vmatpush3.bf16.msra.mxu0 %v739_v19  ;;  %v156_v16 = vld [vmem:[#allocation7 + $0x378] sm:$0xff]  ;;  %v759_v17 = vpack.c.bf16 %v124_v12, %v123_v11 }
  0x53   :  { %742 = vmatprep.subr.bf16.mxu0 %v741_v21  ;;  %v791_v18 = vpack.c.bf16 %v156_v16, %v155_v15 }
  0x54   :  { %772 = vmatpush3.bf16.msra.mxu1 %v771_v20  ;;  %v524_v20 = vld [vmem:[%s967_s3] ss:$0 sm:$0xff]  ;;  %s514_s3 = sshll.u32 %s878_s17, 4  ;;  %s515_s3 = int_to_ptr.vmem [resolvable:$true] %s514_s3 }
  0x55   :  { %774 = vmatprep.subr.bf16.mxu1 %v773_v25  ;;  %s845_s18 = scalar_lea.vmem %s515_s3, 32  ;;  %p850_p3 = scmp.lt.s32.totalorder %s515_s3, %s515_s3 }
  0x56   :  { %744 = vmatpush3.bf16.msra.mxu0 %v743_v32  ;;  %p846_p2 = scmp.ne.s32.totalorder %s515_s3, %s845_s18  ;;  %p851_p4 = scmp.lt.s32.totalorder %s845_s18, %s845_s18 }
  0x57   :  { %746 = vmatprep.subr.bf16.mxu0 %v745_v36 }
  0x58   :  { %776 = vmatpush3.bf16.msra.mxu1 %v775_v35  ;;  %v505_v35 = vstv %s964_s0  ;;  %p852_p5 = por %p851_p4, %p850_p3 }
  0x59   :  { %778 = vmatprep.subr.bf16.mxu1 %v777_v40 }
  0x5a   :  { %748 = vmatpush3.bf16.msra.mxu0 %v747_v48  ;;  %p853_p6 = pnand %p852_p5, %p846_p2 }
  0x5b   :  { %750 = vmatprep.subr.bf16.mxu0 %v749_v51 }
  0x5c   :  { %780 = vmatpush3.bf16.msra.mxu1 %v779_v50 }
  0x5d   :  { %782 = vmatprep.subr.bf16.mxu1 %v781_v55 }
  0x5e   :  { %752 = vmatpush3.bf16.msra.mxu0 %v751_v60 }
  0x5f   :  { %754 = vmatprep.subr.bf16.mxu0 %v753_v62 }
  0x60   :  { %784 = vmatpush3.bf16.msra.mxu1 %v783_v61 }
  0x61   :  { %786 = vmatprep.subr.bf16.mxu1 %v785_v2 }
  0x62   :  { %756 = vmatpush3.bf16.msra.mxu0 %v755_v8 }
  0x63   :  { %758 = vmatprep.subr.bf16.mxu0 %v757_v10 }
  0x64   :  { %788 = vmatpush3.bf16.msra.mxu1 %v787_v9 }
  0x65   :  { %790 = vmatprep.subr.bf16.mxu1 %v789_v14 }
  0x66   :  { %760 = vmatpush3.bf16.msra.mxu0 %v759_v17 }
  0x68   :  { %792 = vmatpush3.bf16.msra.mxu1 %v791_v18 }
  0x69   :  { %429 = vmatmul.mubr.f32.vlgmr.msra.gmra.mrb[2].mxu0 %v940_v33 }
  0x6b   :  { %499 = vmatmul.mubr.f32.vlgmr.msra.gmra.mrb[2].mxu1 %v213_v45 }
 0x11c   :  { %v557_v19 = vpop.f32.mrb[0].mxu0 }
 0x11d   :  { %v558_v21 = vpop.f32.mrb[1].mxu0 }
 0x11e   :  { %v592_v22 = vpop.f32.mrb[0].mxu1  ;;  %v559_v23 = vadd.f32 %v558_v21, %v557_v19 }
 0x11f   :  { %v593_v24 = vpop.f32.mrb[1].mxu1 }
 0x120   :  { %v594_v25 = vadd.f32 %v593_v24, %v592_v22  ;;  %v291_v26 = vadd.f32 %v559_v23, %v524_v20 }
 0x122   :  { %v361_v27 = vadd.f32 %v594_v25, %v291_v26 }
 0x13c   :  { %v627_v28 = vpop.f32.mrb[2].mxu0 }
 0x13d   :  { %v628_v29 = vpop.f32.mrb[3].mxu0 }
 0x13e   :  { %v662_v30 = vpop.f32.mrb[2].mxu1  ;;  %v629_v31 = vadd.f32 %v628_v29, %v627_v28 }
 0x13f   :  { %v663_v32 = vpop.f32.mrb[3].mxu1 }
 0x140   :  { %v664_v34 = vadd.f32 %v663_v32, %v662_v30  ;;  %v431_v33 = vadd.f32 %v629_v31, %v361_v27 }
 0x142   :  { %v501_v36 = vadd.f32 %v664_v34, %v431_v33 }
 0x144   :  { %v506_v37 = vmul.f32 %v505_v35, %v501_v36 }
 0x146   :  { %507 = vst [vmem:[#allocation9] sm:$0x3] %v506_v37 }
 0x147   :  { %856 = shalt.err (!%p853_p6)
}
 0x148   :  { %s857_s21 = scalar_lea.hbm %s968_s4, 32 }
 0x149   :  { %p858_p7 = scmp.ne.s32.totalorder %s968_s4, %s857_s21  ;;  %p861_p8 = scmp.lt.u32.totalorder %s857_s21, %s968_s4 }
 0x14b   :  { %p863_p9 = pnand %p861_p8, %p858_p7 }
 0x14d   :  { %866 = shalt.err (!%p863_p9)
}
 0x14e   :  { %517 = dma.vmem_to_hbm [thread:$0]  %s515_s3, 32, %s968_s4, [#allocation6]  }
 0x14f   :  { %871 = dma.done.wait [#allocation6], 32  }
 0x150   :  { %872 = vsyncadd [#allocation6], 4294967264 }
 0x151   :  { %521 = vsyncpa [#allocation5], 1 }
 0x152   :  { %522 = vsyncpa [#allocation8], 1 }
 0x153   :  { %523 = vsyncpa [#allocation6], 1 }

</bundles_post_ra>
